<compile_context>
chip_gen: v5e
topology: v5e:2x2
jax: 0.10.0
libtpu: 0.0.40
codegen_flags: <defaults>
</compile_context>

<pallas_src>
import numpy as np
import jax
import jax.numpy as jnp
from jax.experimental import pallas as pl
from jax.experimental.pallas import tpu as pltpu


def _shell_fused_kernel(a_ref, x_ref, o_ref):
    # a_ref: [V, S*C] (f32, resident), x_ref: [S*C, TILE_M], o_ref: [V, TILE_M]
    o_ref[...] = jnp.dot(
        a_ref[...], x_ref[...], preferred_element_type=jnp.float32
    ).astype(o_ref.dtype)


def _build_fused_matrix(sh2s_list, shell_inverse, C, V):
    """Static [V, S*C] f32 matrix fusing the per-shell SH2S contraction AND the
    scatter along V (row v already sits at its final destination).  Built in
    NumPy so it costs no device scatters / constant-folds under jit."""
    S = len(sh2s_list)
    shell_inverse_np = np.asarray(shell_inverse)
    A = np.zeros((V, S * C), dtype=np.float32)
    for i in range(S):
        idx = np.nonzero(shell_inverse_np == i)[0]                 # destinations (increasing)
        a_i = np.asarray(sh2s_list[i], dtype=np.float32)[:C].T     # [P_i, C]
        A[idx, i * C:(i + 1) * C] = a_i
    return jnp.asarray(A)


_VMEM_WORKSET_BUDGET = 24 << 20   # double-buffered working set; safe on v5e/v6e/v7x
_MAX_TILE_M = 8192


def _pick_tile_m(SC, V, M, itemsize):
    # Bytes of VMEM per spatial lane: double-buffered x tile + double-buffered
    # output tile + f32 matmul result.
    per_lane = 2 * SC * itemsize + 2 * V * itemsize + 4 * V
    if M < 128:
        return M, per_lane                                     # single (full-extent) step
    tile = (_VMEM_WORKSET_BUDGET // per_lane) // 128 * 128
    tile = max(128, min(tile, (M // 128) * 128, _MAX_TILE_M))  # never exceeds M
    return tile, per_lane


def shell_compute_signal(x, sh2s_list, shell_inverse, V):
    """JAX/Pallas equivalent of ShellComputeSignal.forward.

    x:             [B, Cin, S, C, X, Y, Z]
    sh2s_list[i]:  [C_full_i, P_i]   (SH2S buffer of shell i)
    shell_inverse: [V] int array, shell index of each gradient vector
    returns        [B, Cin, V, X, Y, Z]
    """
    B, Cin, S, C, X, Y, Z = x.shape
    M = X * Y * Z
    BC = B * Cin
    SC = S * C
    itemsize = jnp.dtype(x.dtype).itemsize

    A = _build_fused_matrix(sh2s_list, shell_inverse, C, V)    # kept in float32

    # Metadata-only reshape: (B,Cin), (S,C), (X,Y,Z) are adjacent contiguous axes.
    x_r = x.reshape(BC, SC, M)

    tile, per_lane = _pick_tile_m(SC, V, M, itemsize)
    num_m = pl.cdiv(M, tile)

    vmem_need = per_lane * tile + 2 * V * SC * 4 + (4 << 20)   # working set + slack
    vmem_limit = int(min(max(vmem_need, 16 << 20), 56 << 20))

    out = pl.pallas_call(
        _shell_fused_kernel,
        out_shape=jax.ShapeDtypeStruct((BC, V, M), x.dtype),
        grid_spec=pltpu.PrefetchScalarGridSpec(
            num_scalar_prefetch=0,
            # Large spatial-tile axis first -> v7x's 2 TensorCores split it evenly.
            grid=(num_m, BC),
            in_specs=[
                # Small fused SH matrix: constant block index -> DMA'd once, resident.
                pl.BlockSpec((V, SC), lambda m, bc: (0, 0)),
                # Streamed input: full S*C on sublanes, lane-dense spatial tile.
                # Ragged last tile handled by Pallas (masked writeback; no pad/slice).
                pl.BlockSpec((None, SC, tile), lambda m, bc: (bc, 0, m)),
            ],
            # Lane-dense output tile (tile multiple of 128 unless M < 128).
            out_specs=pl.BlockSpec((None, V, tile), lambda m, bc: (bc, 0, m)),
        ),
        compiler_params=pltpu.CompilerParams(
            dimension_semantics=("parallel", "parallel"),
            vmem_limit_bytes=vmem_limit,
        ),
        cost_estimate=pl.CostEstimate(
            flops=2 * V * SC * BC * M,
            transcendentals=0,
            bytes_accessed=(SC + V) * BC * M * itemsize + V * SC * 4,
        ),
    )(A, x_r)

    # Metadata-only reshape back to the module's output layout.
    return out.reshape(B, Cin, V, X, Y, Z)


if __name__ == "__main__":
    # Small synthetic ShellSampling:
    #   S = 2 shells, 8 vectors per shell (V = 16), C = 6 SH coeffs used,
    #   SH2S buffers [C_full=15, P_i=8], interleaved shell_inverse,
    #   spatial 5x5x6 (M = 150, NOT a multiple of 128 -> exercises ragged tile).
    B, Cin, S, C, X, Y, Z = 2, 3, 2, 6, 5, 5, 6
    C_full = 15
    P = [8, 8]
    V = sum(P)
    shell_inverse = np.array([0, 1] * 8, dtype=np.int32)

    key = jax.random.PRNGKey(0)
    k1, k2, k3 = jax.random.split(key, 3)
    sh2s_list = [
        jax.random.normal(k1, (C_full, P[0]), jnp.float32),
        jax.random.normal(k2, (C_full, P[1]), jnp.float32),
    ]
    x = jax.random.normal(k3, (B, Cin, S, C, X, Y, Z), jnp.float32)

    y = shell_compute_signal(x, sh2s_list, shell_inverse, V)
    y = jax.block_until_ready(y)

    # Pure-JAX reference (mirrors the PyTorch forward exactly).
    y_ref = jnp.zeros((B, Cin, V, X, Y, Z), jnp.float32)
    for i in range(S):
        out_i = jnp.einsum('ijklmn,kp->ijplmn', x[:, :, i], sh2s_list[i][:C])
        idx = np.nonzero(shell_inverse == i)[0]
        y_ref = y_ref.at[:, :, idx].set(out_i)

    assert y.shape == (B, Cin, V, X, Y, Z)
    np.testing.assert_allclose(np.asarray(y), np.asarray(y_ref), rtol=1e-5, atol=1e-5)
    print("KERNEL_OK")
</pallas_src>

<mosaic_0001>
module attributes {stable_mosaic.version = 11 : i64} {
  func.func @_shell_fused_kernel(%arg0: i32, %arg1: i32, %arg2: memref<16x12xf32, #tpu.memory_space<vmem>>, %arg3: memref<1x12x128xf32, #tpu.memory_space<vmem>>, %arg4: memref<1x16x128xf32, #tpu.memory_space<vmem>>) attributes {dimension_semantics = [#tpu.dimension_semantics<parallel>, #tpu.dimension_semantics<parallel>], iteration_bounds = array<i64: 2, 6>, scalar_prefetch = 0 : i64, scratch_operands = 0 : i64, tpu.core_type = #tpu.core_type<tc>, window_params = [{pipeline_mode = #tpu.pipeline_mode<synchronous>, transform_indices = @transform_0, window_bounds = array<i64: 16, 12>}, {transform_indices = @transform_1, window_bounds = array<i64: 1, 12, 128>}, {transform_indices = @transform_2, window_bounds = array<i64: 1, 16, 128>}]} {
    %c0 = arith.constant 0 : index
    %c0_0 = arith.constant 0 : index
    %0 = vector.load %arg2[%c0, %c0_0] : memref<16x12xf32, #tpu.memory_space<vmem>>, vector<16x12xf32>
    %c0_1 = arith.constant 0 : index
    %c0_2 = arith.constant 0 : index
    %c0_3 = arith.constant 0 : index
    %1 = vector.load %arg3[%c0_1, %c0_2, %c0_3] : memref<1x12x128xf32, #tpu.memory_space<vmem>>, vector<1x12x128xf32>
    %2 = vector.shape_cast %1 : vector<1x12x128xf32> to vector<12x128xf32>
    %cst = arith.constant dense<0.000000e+00> : vector<16x128xf32>
    %3 = tpu.matmul %0, %2, %cst {dimension_numbers = #tpu.dot_dimension_numbers<[1], [0], [0], [1], [0, 0, 1, 1], [], []>} : vector<16x12xf32>, vector<12x128xf32>, vector<16x128xf32> -> vector<16x128xf32>
    %c0_4 = arith.constant 0 : index
    %c0_5 = arith.constant 0 : index
    %c0_6 = arith.constant 0 : index
    %4 = vector.load %arg4[%c0_4, %c0_5, %c0_6] : memref<1x16x128xf32, #tpu.memory_space<vmem>>, vector<1x16x128xf32>
    %5 = vector.shape_cast %4 : vector<1x16x128xf32> to vector<16x128xf32>
    %6 = vector.shape_cast %3 : vector<16x128xf32> to vector<1x16x128xf32>
    tpu.vector_store %arg4[%c0_4, %c0_5, %c0_6], %6 {strides = array<i32>} : memref<1x16x128xf32, #tpu.memory_space<vmem>>, vector<1x16x128xf32>,
    return
  }
  func.func @transform_0(%arg0: i32, %arg1: i32) -> (i32, i32) {
    %c0_i32 = arith.constant 0 : i32
    %c0_i32_0 = arith.constant 0 : i32
    %c0_i32_1 = arith.constant 0 : i32
    return %c0_i32, %c0_i32_0 : i32, i32
  }
  func.func @transform_1(%arg0: i32, %arg1: i32) -> (i32, i32, i32) {
    %c0_i32 = arith.constant 0 : i32
    %c0_i32_0 = arith.constant 0 : i32
    return %arg1, %c0_i32, %arg0 : i32, i32, i32
  }
  func.func @transform_2(%arg0: i32, %arg1: i32) -> (i32, i32, i32) {
    %c0_i32 = arith.constant 0 : i32
    %c0_i32_0 = arith.constant 0 : i32
    return %arg1, %c0_i32, %arg0 : i32, i32, i32
  }
}

</mosaic_0001>

<bundles_post_ra>
// kernel: tpu_custom_call.1
= control target key start
LH: loop header
LB: loop body
LE: loop exit
PB: predicated region body
PF: predicated region fallthrough
CT: control target
= control target key end

     0   :  { %s836_s0 = inlined_call_operand.hbm [shape: f32[16,12], index: 0, kind: input, shape index: {}]   ;;  %s837_s1 = inlined_call_operand.hbm [shape: f32[6,12,150], index: 1, kind: input, shape index: {}]   ;;  %s838_s2 = inlined_call_operand.hbm [shape: f32[6,16,150], index: 2, kind: output, shape index: {}]  }
   0x1   :  { %845 = sst [smem:[#allocation15_spill]] %s836_s0 }
   0x2   :  { %7 = vsyncpa [#allocation3], 0 }
   0x3   :  { %8 = vsyncpa [#allocation6], 0 }
   0x4   :  { %10 = vsyncpa [#allocation6 + $0x1], 0 }
   0x5   :  { %11 = vsyncpa [#allocation4], 0 }
   0x6   :  { %13 = vsyncpa [#allocation4 + $0x1], 0  ;;  %s658_s9 = smov 0   ;;  %s660_s10 = smov 0  }
   0x7   :  { %s662_s11 = smov 0   ;;  %s664_s12 = smov 0  }
   0x8   :  { %s666_s13 = smov 0   ;;  %s668_s14 = smov 0  }
   0x9   :  { %s670_s15 = smov 0   ;;  %s672_s16 = smov 0  }
   0xa LB: > { %846 = sst [smem:[#allocation11_spill]] %s606_s9  ;;  %s355_s17 = sadd.s32 4294967295, %s634_s16   ;;  %s634_s16 = sphi %s672_s16, %s19_s16   ;;  %s630_s15 = sphi %s670_s15, %s870_s15   ;;  %s626_s14 = sphi %s668_s14, %s869_s14   ;;  %s622_s13 = sphi %s666_s13, %s868_s13   ;;  %s618_s12 = sphi %s664_s12, %s867_s12   ;;  %s614_s11 = sphi %s662_s11, %s866_s11   ;;  %s610_s10 = sphi %s660_s10, %s865_s10   ;;  %s606_s9 = sphi %s658_s9, %s864_s9  }
   0xb   : > { %s356_s18 = sadd.s32 4294967294, %s634_s16   ;;  %p74_p0 = scmp.ne.s32.totalorder %s610_s10, %s606_s9 }
   0xc   : > { %p702_p1 = scmp.eq.s32.totalorder %s355_s17, 0  ;;  %p706_p2 = scmp.eq.s32.totalorder %s355_s17, 11 }
   0xd   : > { %p106_p3 = scmp.eq.s32.totalorder %s356_s18, 11  ;;  %p357_p5 = scmp.ge.s32.totalorder %s634_s16, 1 }
   0xe   : > { %p712_p4 = por %p702_p1, %p74_p0  ;;  %p113_p7 = scmp.lt.s32.totalorder %s634_s16, 13 }
   0xf   : > { %p717_p6 = por %p106_p3, %p74_p0  ;;  %s852_s0 = sld [smem:[#allocation15_spill]] }
  0x10   : > { %p725_p8 = pnand %p357_p5, %p113_p7  ;;  %s636_s27 = smov [#allocation2]  }
  0x11   : > { %s850_s22 = scalar_select %p717_p6, 1, 0 }
  0x12   : > { %p385_p9 = pneg %p725_p8  ;;  %s126_s28 = sshll.u32 %s636_s27, 4  ;;  %s127_s28 = int_to_ptr.vmem [resolvable:$true] %s126_s28 }
  0x13   : > { %851 = sst [smem:[#allocation12_spill]] %s850_s22  ;;  %s839_s29 = smov 128  }
  0x14   : > { %p386_p10 = pnand %p385_p9, %p702_p1  ;;  %s840_s30 = smov 8  }
  0x15   : > { %s124_s25 = sshll.u32 %s852_s0, 4  ;;  %s28_s3 = sadd.s32 1, %s626_s14  ;;  %s125_s25 = int_to_ptr.hbm [resolvable:$true] %s124_s25 }
  0x16   : > { %388 = dma.hbm_to_vmem [thread:$0]  (!%p386_p10), %s125_s25, 256, %s127_s28, [#allocation3], %s839_s29, %s839_s29, %s840_s30  }
  0x17   : > { %p29_p11 = scmp.ge.s32.totalorder %s28_s3, 6  ;;  %s31_s4 = sadd.s32 1, %s630_s15 }
  0x18   : > { %s61_s5 = sadd.s32 1, %s614_s11  ;;  %p68_p12 = scmp.ne.s32.totalorder %s614_s11, %s610_s10 }
  0x19   : > { %s872_s3 = smov (%p29_p11, %s28_s3), 0  ;;  %s874_s4 = smov (!%p29_p11, %s31_s4), %s630_s15 }
  0x1a   : > { %854 = sst [smem:[#allocation13_spill]] %s872_s3  ;;  %s56_s6 = ssub.s32 %s626_s14, %s872_s3 }
  0x1b   : > { %p69_p13 = scmp.eq.s32.totalorder %s634_s16, 0  ;;  %p33_p0 = scmp.ge.s32.totalorder %s874_s4, 2 }
  0x1c   : > { %p749_p3 = por %p706_p2, %p68_p12  ;;  %p398_p7 = scmp.lt.s32.totalorder %s634_s16, 12 }
  0x1d   : > { %p753_p5 = por %p69_p13, %p68_p12  ;;  %s876_s4 = smov (%p33_p0, %s874_s4), 0 }
  0x1e   : > { %857 = sst [smem:[#allocation14_spill]] %s876_s4  ;;  %s140_s17 = sand.u32 1, %s614_s11  }
  0x1f   : > { %s361_s18 = sshll.u32 %s626_s14, 2  ;;  %s57_s23 = ssub.s32 %s630_s15, %s876_s4 }
  0x20   : > { %s58_s24 = sor.u32 %s57_s23, %s56_s6  ;;  %s360_s25 = sshll.u32 %s140_s17, 4 }
  0x21   : > { %p59_p9 = scmp.eq.s32.totalorder %s58_s24, 0  ;;  %s148_s20 = sadd.s32 %s630_s15, %s361_s18 }
  0x22   : > { %s144_s27 = scalar_lea.vmem [#allocation5], %s360_s25  ;;  %s362_s30 = sshll.u32 %s148_s20, 3 }
  0x23   : > { %s153_s28 = sshll.u32 %s144_s27, 4  ;;  %s150_s22 = scalar_lea.hbm %s837_s1, %s362_s30  ;;  %s154_s28 = int_to_ptr.vmem [resolvable:$true] %s153_s28 }
  0x24   : > { %s766_s29 = scalar_select %p59_p9, %s614_s11, %s61_s5  }
  0x25   : > { %p390_p2 = pnand %p398_p7, %p753_p5  ;;  %s151_s9 = sshll.u32 %s150_s22, 4  ;;  %s152_s9 = int_to_ptr.hbm [resolvable:$true] %s151_s9 }
  0x26   : > { %s141_s4 = scalar_lea.sflag [#allocation6], %s140_s17  ;;  %s639_s6 = smov 256  }
  0x27   : > { %s858_s23 = smov 8   ;;  %s859_s24 = smov 128  }
  0x28   : > { %392 = dma.hbm_to_vmem [thread:$0]  (!%p390_p2), %s152_s9, 256, %s154_s28, %s141_s4, %s639_s6, %s859_s24, %s858_s23  }
  0x29   : > { %165 = sbr.rel (%p725_p8) target bundleno = 187 (0xbb), region = 28 }
  0x2e   : > { %593 = dma.done.wait (%p702_p1), [#allocation3], 256  }
  0x2f   : > { %595 = vsyncadd (%p702_p1), [#allocation3], 4294967040  ;;  %s784_s0 = sand.u32 1, %s610_s10  }
  0x30   : > { %s365_s22 = sshll.u32 %s784_s0, 4  ;;  %s173_s30 = scalar_lea.sflag [#allocation6], %s784_s0 }
  0x31   : > { %s176_s3 = scalar_lea.vmem [#allocation5], %s365_s22 }
  0x32   : > { %597 = dma.done.wait (%p712_p4), %s173_s30, 256  }
  0x33   : > { %599 = vsyncadd (%p712_p4), %s173_s30, 4294967040  ;;  %vm209_vm0 = vcmask 1043456   ;;  %v201_v0 = vld [vmem:[%s176_s3 + $0x8] sm:$0xf]  ;;  %v200_v1 = vld [vmem:[%s176_s3] sm:$0xff]  ;;  %vm202_vm1 = vcmask 97280  }
  0x34   : > { %367 = vmatpush.msk.msra.mxu0 %vm209_vm0, %v201_v0  ;;  %375 = vmatpush.msk.msra.mxu1 %vm209_vm0, %v201_v0  ;;  %v198_v2 = vld [vmem:[#allocation2] sm:$0xff]  ;;  %v199_v3 = vld [vmem:[#allocation2 + $0x8] sm:$0xff]  ;;  %s371_s9 = sshll.u32 %s618_s12, 2  ;;  %s197_s8 = scalar_lea.vmem [#allocation7], %s365_s22 }
  0x35   : > { %s249_s19 = sadd.s32 %s622_s13, %s371_s9  ;;  %s252_s17 = sshll.u32 %s197_s8, 4  ;;  %s253_s17 = int_to_ptr.vmem [resolvable:$true] %s252_s17 }
  0x36   : > { %228 = vmatpush.msra.mxu0 %v200_v1  ;;  %376 = vmatpush.msra.mxu1 %v200_v1  ;;  %s372_s26 = sshll.u32 %s249_s19, 3  ;;  %s239_s25 = scalar_lea.sflag [#allocation4], %s784_s0 }
  0x37   : > { %368 = vmatmul.msk.f32.vlgmr.msra.gmra.mxu0 %vm202_vm1, %v198_v2  ;;  %369 = vmatmul.msk.f32.vlgmr.msra.gmra.mxu1 %vm202_vm1, %v199_v3  ;;  %s251_s5 = scalar_lea.hbm %s838_s2, %s372_s26  ;;  %s552_s28 = scalar_lea.hbm %s838_s2, 192 }
  0x38   : > { %s254_s18 = sshll.u32 %s251_s5, 4  ;;  %s255_s18 = int_to_ptr.hbm [resolvable:$true] %s254_s18 }
  0x39   : > { %s546_s20 = sshra.s32 %s255_s18, 4  ;;  %s547_s20 = int_to_ptr.hbm [resolvable:$true] %s546_s20 }
  0x3a   : > { %s548_s12 = scalar_lea.hbm %s547_s20, 16  ;;  %p553_p10 = scmp.lt.s32.totalorder %s547_s20, %s838_s2 }
  0x3b   : > { %p549_p1 = scmp.ne.s32.totalorder %s547_s20, %s548_s12  ;;  %p554_p11 = scmp.lt.s32.totalorder %s552_s28, %s548_s12 }
  0x3d   : > { %p550_p4 = pnand %p549_p1, %p749_p3  ;;  %p555_p12 = por %p554_p11, %p553_p10 }
  0x3f   : > { %p551_p8 = pneg %p550_p4 }
  0x41   : > { %p556_p13 = pnand %p555_p12, %p551_p8 }
  0xb4   : > { %v230_v4 = vpop.f32.mrf.mxu0  ;;  %v233_v5 = vpop.f32.mrf.mxu1 }
  0xb5   : > { %236 = vst [vmem:[%s197_s8] sm:$0xff] %v230_v4 }
  0xb6   : > { %237 = vst [vmem:[%s197_s8 + $0x8] sm:$0xff] %v233_v5 }
  0xb7   : > { %559 = shalt.err (!%p556_p13)
}
  0xb8   : > { %s640_s24 = smov 128   ;;  %s641_s0 = smov 256  }
  0xb9   : > { %s642_s22 = smov 8  }
  0xba   : > { %383 = dma.vmem_to_hbm [thread:$0]  (%p749_p3), %s253_s17, 256, %s255_s18, %s239_s25, %s640_s24, %s641_s0, %s642_s22  }
  0xbb PF: > { %s860_s30 = sld [smem:[#allocation11_spill]]  ;;  %p400_p0 = scmp.ge.s32.totalorder %s634_s16, 2 }
  0xbd   : > { %p394_p5 = pnand %p400_p0, %p717_p6 }
  0xbf   : > { %p395_p7 = pneg %p394_p5 }
  0xc1   : > { %s269_s9 = sand.u32 1, %s860_s30  }
  0xc2   : > { %s270_s19 = scalar_lea.sflag [#allocation4], %s269_s9 }
  0xc3   : > { %601 = dma.done.wait (%p395_p7), %s270_s19, 256  }
  0xc4   : > { %603 = vsyncadd (%p395_p7), %s270_s19, 4294967040  ;;  %s19_s16 = sadd.s32 1, %s634_s16   ;;  %s862_s7 = sld [smem:[#allocation13_spill]] }
  0xc5   : > { %p16_p9 = scmp.ge.s32.totalorder %s19_s16, 14   ;;  %s863_s26 = sld [smem:[#allocation14_spill]] }
  0xc6   : > { %s864_s9 = smov %s610_s10  ;;  %s865_s10 = smov %s614_s11 }
  0xc7   : > { %s866_s11 = smov %s766_s29  ;;  %s867_s12 = smov %s626_s14 }
  0xc8   : > { %s868_s13 = smov %s630_s15  ;;  %18 = sbr.rel (!%p16_p9) target bundleno = 10 (0xa), region = 78 }
  0xca   : > { %s869_s14 = smov %s862_s7 }
  0xcb   : > { %s870_s15 = smov %s863_s26 }
  0xcd   :  { %276 = vsyncpa [#allocation3], 1 }
  0xce   :  { %278 = vsyncpa [#allocation3 + $0x1], 1 }
  0xcf   :  { %279 = vsyncpa [#allocation6], 1 }
  0xd0   :  { %281 = vsyncpa [#allocation6 + $0x1], 1 }
  0xd1   :  { %282 = vsyncpa [#allocation4], 1 }
  0xd2   :  { %284 = vsyncpa [#allocation4 + $0x1], 1 }

</bundles_post_ra>
